<compile_context>
chip_gen: v7x
topology: tpu7x:2x2x1
jax: 0.10.0
libtpu: 0.0.40
codegen_flags: <defaults>
</compile_context>

<pallas_src>
import jax
import jax.numpy as jnp
from jax import lax
from jax.experimental import pallas as pl
from jax.experimental.pallas import tpu as pltpu


def _round_up(v, m):
    return (v + m - 1) // m * m


def _divisors_desc(n):
    small, large = [], []
    d = 1
    while d * d <= n:
        if n % d == 0:
            small.append(d)
            if d != n // d:
                large.append(n // d)
        d += 1
    return sorted(small + large, reverse=True)


def _choose_tile(hw, n_batch, bytes_per_pix, target_bytes=(2 << 20), min_steps=8):
    """Pick the flat-spatial tile `tm` (multiple of 128 lanes).

    Keeps each (input+output) block around `target_bytes` (HBM-bound op: bigger
    blocks only shorten the grid) and tries to leave >= `min_steps` total grid
    steps so the software pipeline / megacore split has work to overlap.
    Returns (tm, pad) where `pad` is how much the flat spatial dim must be
    zero-padded when no suitable divisor exists.
    """
    cap = max(128, (target_bytes // max(bytes_per_pix, 1)) // 128 * 128)
    steps_per_image = max(1, -(-min_steps // max(n_batch, 1)))      # ceil
    pref = max(128, (hw // steps_per_image) // 128 * 128)
    tm = max(128, min(cap, pref))

    best_div = 0
    for d in _divisors_desc(hw):
        if d % 128 == 0 and d <= tm:
            best_div = d
            break
    if best_div and best_div * 4 > tm:          # divisor close to target: no padding
        return best_div, 0

    hwp = -(-hw // tm) * tm                     # pad flat spatial dim up to a multiple
    return tm, hwp - hw


def _upsample_kernel(x_ref, w_ref, b_ref, o_ref):
    # x_ref: (1, Cin, tm)   NCHW-contiguous block (channels on sublanes, pixels on lanes)
    # w_ref: (Cin, 4*Cout)  columns ordered (kh, kw, oc); resident across the grid
    # b_ref: (1, 4*Cout)    bias tiled over (kh, kw)
    # o_ref: (1, tm, 4*Cout) raw matmul result; memory order (pixel, kh, kw, oc)
    x = x_ref[0]                                              # (Cin, tm)
    acc = lax.dot_general(
        x, w_ref[...],
        dimension_numbers=(((0,), (0,)), ((), ())),           # contract Cin (lhs dim 0)
        preferred_element_type=jnp.float32,
    )                                                          # (tm, 4*Cout)
    acc = acc + b_ref[...].astype(jnp.float32)
    o_ref[0] = acc.astype(o_ref.dtype)


def upsample_conv_transpose2d(x_nchw, weight, bias):
    """ConvTranspose2d(kernel_size=2, stride=2) forward.

    x_nchw : (N, Cin, H, W)
    weight : (Cin, Cout, 2, 2)   (PyTorch ConvTranspose2d weight layout)
    bias   : (Cout,)
    returns: (N, Cout, 2H, 2W)
    """
    N, Cin, H, W = x_nchw.shape
    Cout = weight.shape[1]
    K4 = 4 * Cout
    HW = H * W
    dtype = x_nchw.dtype
    isz = jnp.dtype(dtype).itemsize

    # weight (Cin, Cout, kh, kw) -> (Cin, (kh, kw, oc)); bias tiled over (kh, kw).
    w4 = jnp.transpose(weight, (0, 2, 3, 1)).reshape(Cin, K4).astype(dtype)
    b4 = jnp.tile(bias, 4).reshape(1, K4).astype(dtype)

    # --- tile sizing: ~2 MiB blocks, >= 8 grid steps, lanes always multiple of 128 ---
    bytes_per_pix = (_round_up(Cin, 8) + _round_up(K4, 128)) * isz
    tm, pad = _choose_tile(HW, N, bytes_per_pix)
    hwp = HW + pad
    S = hwp // tm

    # NCHW is contiguous, so this reshape is free (metadata only).
    x_flat = x_nchw.reshape(N, Cin, HW)
    if pad:
        x_flat = jnp.pad(x_flat, ((0, 0), (0, 0), (0, pad)))

    # --- VMEM accounting: double-buffered blocks + resident weight/bias + margin ---
    in_blk = _round_up(Cin, 8) * tm * isz
    out_blk = tm * _round_up(K4, 128) * isz
    w_blk = _round_up(Cin, 8) * _round_up(K4, 128) * isz
    b_blk = 8 * 128 * isz
    vmem_needed = 2 * (in_blk + out_blk + w_blk + b_blk) + in_blk + out_blk + (1 << 20)
    vmem_limit = int(min(vmem_needed + (2 << 20), 96 << 20))

    out = pl.pallas_call(
        _upsample_kernel,
        out_shape=jax.ShapeDtypeStruct((N, hwp, K4), dtype),
        grid_spec=pltpu.PrefetchScalarGridSpec(
            num_scalar_prefetch=0,
            grid=(N, S),
            in_specs=[
                pl.BlockSpec((1, Cin, tm), lambda n, s: (n, 0, s)),
                pl.BlockSpec((Cin, K4), lambda n, s: (0, 0)),
                pl.BlockSpec((1, K4), lambda n, s: (0, 0)),
            ],
            out_specs=pl.BlockSpec((1, tm, K4), lambda n, s: (n, s, 0)),
        ),
        compiler_params=pltpu.CompilerParams(
            dimension_semantics=("parallel", "parallel"),
            vmem_limit_bytes=vmem_limit,
        ),
        cost_estimate=pl.CostEstimate(
            flops=2 * N * HW * Cin * K4,
            transcendentals=0,
            bytes_accessed=(N * HW * (Cin + K4) + Cin * K4 + K4) * isz,
        ),
    )(x_flat, w4, b4)

    if pad:
        out = out[:, :HW, :]

    # (N, HW, 4*Cout) with element order (n, i, j, kh, kw, oc): one XLA transpose
    # produces NCHW of the 2x-upsampled image (the 2x2 scatter rides along for free).
    y6 = out.reshape(N, H, W, 2, 2, Cout)
    y = jnp.transpose(y6, (0, 5, 1, 3, 2, 4)).reshape(N, Cout, 2 * H, 2 * W)
    return y


def _reference_conv_transpose2d(x_nchw, weight, bias):
    # Pure-JAX reference of the no-overlap k=2, s=2 transposed conv.
    y = jnp.einsum("nchw,cokl->nohwkl", x_nchw, weight)
    N, Cout, H, W, _, _ = y.shape
    y = jnp.transpose(y, (0, 1, 2, 4, 3, 5)).reshape(N, Cout, 2 * H, 2 * W)
    return y + bias[None, :, None, None]


if __name__ == "__main__":
    key = jax.random.PRNGKey(0)
    k_x, k_w, k_b = jax.random.split(key, 3)

    N, Cin, Cout, H, W = 2, 4, 8, 16, 16
    x = jax.random.normal(k_x, (N, Cin, H, W), dtype=jnp.float32)

    # Deterministic synthetic params (PyTorch would use kaiming-uniform; shapes match).
    weight = jax.random.normal(k_w, (Cin, Cout, 2, 2), dtype=jnp.float32) * 0.1
    bias = jax.random.normal(k_b, (Cout,), dtype=jnp.float32) * 0.1

    out = upsample_conv_transpose2d(x, weight, bias)
    out = jax.block_until_ready(out)

    ref = _reference_conv_transpose2d(x, weight, bias)
    assert out.shape == (N, Cout, 2 * H, 2 * W), out.shape
    assert jnp.allclose(out, ref, atol=1e-5, rtol=1e-5), "mismatch vs reference"

    print("KERNEL_OK")
</pallas_src>

<mosaic_0001>
module attributes {stable_mosaic.version = 11 : i64} {
  func.func @_upsample_kernel(%arg0: i32, %arg1: i32, %arg2: memref<1x4x128xf32, #tpu.memory_space<vmem>>, %arg3: memref<4x32xf32, #tpu.memory_space<vmem>>, %arg4: memref<1x32xf32, #tpu.memory_space<vmem>>, %arg5: memref<1x128x32xf32, #tpu.memory_space<vmem>>) attributes {dimension_semantics = [#tpu.dimension_semantics<parallel>, #tpu.dimension_semantics<parallel>], iteration_bounds = array<i64: 2, 2>, scalar_prefetch = 0 : i64, scratch_operands = 0 : i64, tpu.core_type = #tpu.core_type<tc>, window_params = [{transform_indices = @transform_0, window_bounds = array<i64: 1, 4, 128>}, {pipeline_mode = #tpu.pipeline_mode<synchronous>, transform_indices = @transform_1, window_bounds = array<i64: 4, 32>}, {pipeline_mode = #tpu.pipeline_mode<synchronous>, transform_indices = @transform_2, window_bounds = array<i64: 1, 32>}, {transform_indices = @transform_3, window_bounds = array<i64: 1, 128, 32>}]} {
    %c0 = arith.constant 0 : index
    %c0_0 = arith.constant 0 : index
    %c0_1 = arith.constant 0 : index
    %0 = vector.load %arg2[%c0, %c0_0, %c0_1] : memref<1x4x128xf32, #tpu.memory_space<vmem>>, vector<1x4x128xf32>
    %1 = vector.shape_cast %0 : vector<1x4x128xf32> to vector<4x128xf32>
    %c0_2 = arith.constant 0 : index
    %c0_3 = arith.constant 0 : index
    %2 = vector.load %arg3[%c0_2, %c0_3] : memref<4x32xf32, #tpu.memory_space<vmem>>, vector<4x32xf32>
    %cst = arith.constant dense<0.000000e+00> : vector<128x32xf32>
    %3 = tpu.matmul %1, %2, %cst {dimension_numbers = #tpu.dot_dimension_numbers<[0], [0], [1], [1], [0, 1, 1, 1], [], []>} : vector<4x128xf32>, vector<4x32xf32>, vector<128x32xf32> -> vector<128x32xf32>
    %c0_4 = arith.constant 0 : index
    %c0_5 = arith.constant 0 : index
    %4 = vector.load %arg4[%c0_4, %c0_5] : memref<1x32xf32, #tpu.memory_space<vmem>>, vector<1x32xf32>
    %5 = vector.broadcast %4 : vector<1x32xf32> to vector<128x32xf32>
    %6 = arith.addf %3, %5 : vector<128x32xf32>
    %c0_6 = arith.constant 0 : index
    %c0_7 = arith.constant 0 : index
    %c0_8 = arith.constant 0 : index
    %7 = vector.load %arg5[%c0_6, %c0_7, %c0_8] : memref<1x128x32xf32, #tpu.memory_space<vmem>>, vector<1x128x32xf32>
    %8 = vector.shape_cast %7 : vector<1x128x32xf32> to vector<128x32xf32>
    %9 = vector.shape_cast %6 : vector<128x32xf32> to vector<1x128x32xf32>
    tpu.vector_store %arg5[%c0_6, %c0_7, %c0_8], %9 {strides = array<i32>} : memref<1x128x32xf32, #tpu.memory_space<vmem>>, vector<1x128x32xf32>,
    return
  }
  func.func @transform_0(%arg0: i32, %arg1: i32) -> (i32, i32, i32) {
    %c0_i32 = arith.constant 0 : i32
    %c0_i32_0 = arith.constant 0 : i32
    return %arg0, %c0_i32, %arg1 : i32, i32, i32
  }
  func.func @transform_1(%arg0: i32, %arg1: i32) -> (i32, i32) {
    %c0_i32 = arith.constant 0 : i32
    %c0_i32_0 = arith.constant 0 : i32
    %c0_i32_1 = arith.constant 0 : i32
    return %c0_i32, %c0_i32_0 : i32, i32
  }
  func.func @transform_2(%arg0: i32, %arg1: i32) -> (i32, i32) {
    %c0_i32 = arith.constant 0 : i32
    %c0_i32_0 = arith.constant 0 : i32
    %c0_i32_1 = arith.constant 0 : i32
    return %c0_i32, %c0_i32_0 : i32, i32
  }
  func.func @transform_3(%arg0: i32, %arg1: i32) -> (i32, i32, i32) {
    %c0_i32 = arith.constant 0 : i32
    %c0_i32_0 = arith.constant 0 : i32
    return %arg0, %arg1, %c0_i32 : i32, i32, i32
  }
}

</mosaic_0001>

<bundles_post_ra>
// kernel: tpu_custom_call.1
= control target key start
LH: loop header
LB: loop body
LE: loop exit
PB: predicated region body
PF: predicated region fallthrough
CT: control target
= control target key end

     0   :  { %s1145_s0 = inlined_call_operand.hbm [shape: f32[2,4,256], index: 0, kind: input, shape index: {}]   ;;  %s1146_s1 = inlined_call_operand.hbm [shape: f32[4,32], index: 1, kind: input, shape index: {}]   ;;  %s1147_s2 = inlined_call_operand.vmem [shape: f32[1,32], index: 2, kind: input, shape index: {}]   ;;  %s1148_s3 = inlined_call_operand.vmem [shape: f32[2,256,32], index: 3, kind: output, shape index: {}]  }
   0x1   :  { %1153 = sst [smem:[#allocation8_spill]] %s1146_s1 }
   0x2   :  { %8 = vsyncpa [#allocation3], 0 }
   0x3   :  { %10 = vsyncpa [#allocation3 + $0x1], 0 }
   0x4   :  { %11 = vsyncpa [#allocation5], 0  ;;  %s905_s12 = smov 0   ;;  %s907_s13 = smov 0  }
   0x5   :  { %s909_s14 = smov 0   ;;  %s911_s15 = smov 0  }
   0x6   :  { %s913_s16 = smov 0   ;;  %s915_s17 = smov 0  }
   0x7   :  { %s917_s18 = smov 0   ;;  %s919_s19 = smov 0  }
   0x8 LB: > { %s591_s20 = sadd.s32 4294967295, %s881_s19   ;;  %p51_p0 = scmp.ne.s32.totalorder %s857_s13, %s853_s12  ;;  %s881_s19 = sphi %s919_s19, %s17_s19   ;;  %s877_s18 = sphi %s917_s18, %s1170_s18   ;;  %s873_s17 = sphi %s915_s17, %s1169_s17   ;;  %s869_s16 = sphi %s913_s16, %s1168_s16   ;;  %s865_s15 = sphi %s911_s15, %s1167_s15   ;;  %s861_s14 = sphi %s909_s14, %s1166_s14   ;;  %s857_s13 = sphi %s907_s13, %s1165_s13   ;;  %s853_s12 = sphi %s905_s12, %s1164_s12  }
   0x9   : > { %p945_p1 = scmp.eq.s32.totalorder %s591_s20, 0  ;;  %p593_p2 = scmp.ge.s32.totalorder %s881_s19, 1 }
   0xa   : > { %p132_p3 = scmp.lt.s32.totalorder %s881_s19, 5  ;;  %s883_s24 = smov [#allocation4]  }
   0xb   : > { %s1154_s21 = scalar_select %p945_p1, 1, 0 }
   0xc   : > { %p953_p4 = por %p945_p1, %p51_p0  ;;  %p957_p5 = pnand %p593_p2, %p132_p3 }
   0xd   : > { %s145_s25 = sshll.u32 %s883_s24, 4  ;;  %s26_s27 = sadd.s32 1, %s873_s17  ;;  %s146_s25 = int_to_ptr.vmem [resolvable:$true] %s145_s25 }
   0xe   : > { %s1155_s22 = scalar_select %p953_p4, 1, 0 }
   0xf   : > { %s1156_s23 = scalar_select %p957_p5, 1, 0 }
  0x10   : > { %p676_p6 = pneg %p957_p5  ;;  %s1158_s1 = sld [smem:[#allocation8_spill]] }
  0x12   : > { %p965_p7 = pnand %p676_p6, %p945_p1 }
  0x14   : > { %p755_p9 = pneg %p965_p7 }
  0x16   : > { %s753_s30 = scalar_lea.hbm %s1158_s1, 64 }
  0x17   : > { %p754_p8 = scmp.ne.s32.totalorder %s1158_s1, %s753_s30  ;;  %p760_p12 = scmp.lt.u32.totalorder %s753_s30, %s1158_s1 }
  0x19   : > { %p756_p10 = pnand %p755_p9, %p754_p8 }
  0x1b   : > { %p757_p11 = pneg %p756_p10 }
  0x1d   : > { %p762_p13 = pnand %p760_p12, %p757_p11 }
  0x1f   : > { %765 = shalt.err (!%p762_p13)
}
  0x20   : > { %s766_s8 = scalar_lea.vmem %s146_s25, 64  ;;  %p774_p6 = scmp.lt.s32.totalorder %s146_s25, %s146_s25 }
  0x21   : > { %p767_p0 = scmp.ne.s32.totalorder %s146_s25, %s766_s8  ;;  %p775_p1 = scmp.lt.s32.totalorder %s766_s8, %s766_s8 }
  0x23   : > { %p769_p2 = pnand %p767_p0, %p755_p9  ;;  %p776_p4 = por %p775_p1, %p774_p6 }
  0x25   : > { %p770_p3 = pneg %p769_p2 }
  0x27   : > { %p777_p5 = pnand %p776_p4, %p770_p3 }
  0x29   : > { %780 = shalt.err (!%p777_p5)
}
  0x2a   : > { %679 = dma.hbm_to_vmem [thread:$0]  (!%p965_p7), %s1158_s1, 64, %s146_s25, [#allocation5]  }
  0x2b   : > { %p27_p8 = scmp.ge.s32.totalorder %s26_s27, 2  ;;  %s29_s11 = sadd.s32 1, %s877_s18 }
  0x2c   : > { %s38_s12 = sadd.s32 1, %s861_s14  ;;  %p45_p1 = scmp.ne.s32.totalorder %s861_s14, %s857_s13 }
  0x2d   : > { %s1172_s27 = smov (%p27_p8, %s26_s27), 0  ;;  %s1174_s11 = smov (!%p27_p8, %s29_s11), %s877_s18 }
  0x2e   : > { %p46_p4 = scmp.eq.s32.totalorder %s881_s19, 0  ;;  %p31_p5 = scmp.ge.s32.totalorder %s1174_s11, 2 }
  0x2f   : > { %s34_s20 = ssub.s32 %s873_s17, %s1172_s27  ;;  %p685_p9 = scmp.lt.s32.totalorder %s881_s19, 4 }
  0x30   : > { %s159_s24 = sand.u32 1, %s861_s14   ;;  %s1176_s11 = smov (%p31_p5, %s1174_s11), 0 }
  0x31   : > { %p1000_p7 = por %p46_p4, %p45_p1  ;;  %s596_s26 = sshll.u32 %s159_s24, 2 }
  0x32   : > { %s33_s28 = ssub.s32 %s877_s18, %s1176_s11  ;;  %s597_s30 = sshll.u32 %s877_s18, 1 }
  0x33   : > { %s35_s29 = sor.u32 %s34_s20, %s33_s28  ;;  %s168_s4 = sadd.s32 %s873_s17, %s597_s30 }
  0x34   : > { %p36_p10 = scmp.eq.s32.totalorder %s35_s29, 0  ;;  %s598_s5 = sshll.u32 %s168_s4, 6 }
  0x35   : > { %s163_s6 = scalar_lea.vmem [#allocation2], %s596_s26  ;;  %s1014_s1 = scalar_lea.hbm %s1145_s0, %s598_s5 }
  0x36   : > { %s172_s7 = sshll.u32 %s163_s6, 4  ;;  %p1022_p11 = pnand %p685_p9, %p1000_p7  ;;  %s1016_s7 = int_to_ptr.vmem [resolvable:$true] %s172_s7 }
  0x37   : > { %s1009_s8 = scalar_select %p36_p10, %s861_s14, %s38_s12  }
  0x38   : > { %s160_s12 = scalar_lea.sflag [#allocation3], %s159_s24  ;;  %s781_s26 = scalar_lea.hbm %s1014_s1, 64 }
  0x39   : > { %p782_p12 = scmp.ne.s32.totalorder %s1014_s1, %s781_s26  ;;  %p783_p13 = pneg %p1022_p11 }
  0x3a   : > { %s786_s25 = scalar_lea.hbm %s1145_s0, 256  ;;  %p787_p3 = scmp.lt.u32.totalorder %s1014_s1, %s1145_s0 }
  0x3b   : > { %p784_p0 = pnand %p783_p13, %p782_p12  ;;  %p788_p6 = scmp.lt.u32.totalorder %s786_s25, %s781_s26 }
  0x3c   : > { %p790_p1 = scmp.lt.u32.totalorder %s781_s26, %s1014_s1 }
  0x3d   : > { %p785_p2 = pneg %p784_p0  ;;  %p789_p8 = por %p788_p6, %p787_p3 }
  0x3f   : > { %p791_p4 = por %p790_p1, %p789_p8 }
  0x41   : > { %p792_p5 = pnand %p791_p4, %p785_p2 }
  0x43   : > { %795 = shalt.err (!%p792_p5)
}
  0x44   : > { %s796_s24 = scalar_lea.vmem %s1016_s7, 64  ;;  %s884_s5 = smov [#allocation2]  }
  0x45   : > { %p797_p9 = scmp.ne.s32.totalorder %s1016_s7, %s796_s24  ;;  %s801_s6 = sshll.u32 %s884_s5, 4  ;;  %s802_s6 = int_to_ptr.vmem [resolvable:$false] %s801_s6 }
  0x46   : > { %s803_s9 = scalar_lea.vmem %s802_s6, 128  ;;  %p804_p12 = scmp.lt.s32.totalorder %s1016_s7, %s802_s6 }
  0x47   : > { %p799_p7 = pnand %p797_p9, %p783_p13  ;;  %p805_p0 = scmp.lt.s32.totalorder %s803_s9, %s796_s24 }
  0x49   : > { %p800_p10 = pneg %p799_p7  ;;  %p806_p3 = por %p805_p0, %p804_p12 }
  0x4b   : > { %p807_p6 = pnand %p806_p3, %p800_p10 }
  0x4d   : > { %810 = shalt.err (!%p807_p6)
}
  0x4e   : > { %683 = dma.hbm_to_vmem [thread:$0]  (!%p1022_p11), %s1014_s1, 64, %s1016_s7, %s160_s12  }
  0x4f   : > { %p1161_p2 = scmp.ne.s32.totalorder %s1156_s23, 0 }
  0x50   : > { %s183_s10 = sand.u32 (!%p1161_p2), 1, %s857_s13   ;;  %p1162_p13 = scmp.ne.s32.totalorder (!%p1161_p2), %s1155_s22, 0 }
  0x51   : > { %181 = sbr.rel (%p1161_p2) target bundleno = 498 (0x1f2), region = 32  ;;  %s600_s26 = sshll.u32 (!%p1161_p2), %s183_s10, 2 }
  0x52   : > { %s184_s28 = scalar_lea.sflag (!%p1161_p2), [#allocation3], %s183_s10  ;;  %s187_s29 = scalar_lea.vmem (!%p1161_p2), [#allocation2], %s600_s26 }
  0x58   : > { %844 = dma.done.wait (%p1162_p13), %s184_s28, 64  }
  0x59   : > { %846 = vsyncadd (%p1162_p13), %s184_s28, 4294967232  ;;  %p1163_p8 = scmp.ne.s32.totalorder %s1154_s21, 0 }
  0x5b   : > { %848 = dma.done.wait (%p1163_p8), [#allocation5], 64  }
  0x5c   : > { %850 = vsyncadd (%p1163_p8), [#allocation5], 4294967232  ;;  %v228_v0 = vld [vmem:[%s187_s29] sm:$0xf]  ;;  %v229_v1 = vld [vmem:[#allocation4] sm:$0xf] }
  0x5d   : > { %237 = vxpose.xlu0.b32.start.end [1/1] (short) %v228_v0, 128  ;;  %vm318_vm0 = vcmask 1043456   ;;  %vm269_vm1 = vcmask 31744   ;;  %s602_s1 = sshll.u32 %s865_s15, 4  ;;  %p219_p11 = scmp.lt.s32.totalorder %s869_s16, 1  ;;  %v605_v18 = vld [vmem:[%s1147_s2] ss:$0 sm:$0xff] }
  0x5e   : > { %642 = vmatprep.subr.msk.mxu0 %vm318_vm0, %v229_v1  ;;  %668 = vmatprep.subr.msk.mxu1 %vm318_vm0, %v229_v1  ;;  %p221_p1 = scmp.lt.s32.totalorder %s602_s1, 31  ;;  %vm467_vm2 = vcmask 261120  }
  0x5f   : > { %643 = vmatpush3.msk.msra.mxu0 %vm318_vm0, %v229_v1  ;;  %669 = vmatpush3.msk.msra.mxu1 %vm318_vm0, %v229_v1  ;;  %s1178_s16 = smov (!%p219_p11, %s869_s16), 1 }
  0x60   : > { %s1180_s1 = smov (!%p221_p1, %s602_s1), 31  ;;  %s603_s21 = sshll.u32 %s1178_s16, 5 }
  0x61   : > { %s224_s22 = sadd.s32 %s603_s21, %s1180_s1 }
  0x62   : > { %s604_s23 = sshll.u32 %s224_s22, 3 }
  0x63   : > { %s1087_s30 = scalar_lea.vmem %s1148_s3, %s604_s23 }
  0xdd   : > { %v253_v2 = vpop.trf.xlu0 }
  0xde   : > { %644 = vmatprep.mubr.msk.f32.mxu0 %vm269_vm1, %v253_v2 }
  0xe1   : > { %v254_v3 = vpop.trf.xlu0 }
  0xe2   : > { %645 = vmatmul.mubr.msk.f32.vlgmr.msra.gmra.mrb[0].mxu0 %vm269_vm1, %v254_v3 }
  0xe5   : > { %v255_v4 = vpop.trf.xlu0 }
  0xe6   : > { %647 = vmatprep.mubr.msk.f32.mxu0 %vm269_vm1, %v255_v4 }
  0xe9   : > { %v256_v5 = vpop.trf.xlu0 }
  0xea   : > { %648 = vmatmul.mubr.msk.f32.gmra.mrb[2].mxu0 %vm269_vm1, %v256_v5 }
  0xed   : > { %v257_v6 = vpop.trf.xlu0 }
  0xee   : > { %650 = vmatprep.mubr.msk.f32.mxu0 %vm269_vm1, %v257_v6 }
  0xf1   : > { %v258_v7 = vpop.trf.xlu0 }
  0xf2   : > { %651 = vmatmul.mubr.msk.f32.gmra.mrb[4].mxu0 %vm269_vm1, %v258_v7 }
  0xf5   : > { %v259_v8 = vpop.trf.xlu0 }
  0xf6   : > { %653 = vmatprep.mubr.msk.f32.mxu0 %vm269_vm1, %v259_v8 }
  0xf9   : > { %v260_v9 = vpop.trf.xlu0 }
  0xfa   : > { %654 = vmatmul.mubr.msk.f32.gmra.mrb[6].mxu0 %vm269_vm1, %v260_v9 }
  0xfd   : > { %v261_v10 = vpop.trf.xlu0 }
  0xfe   : > { %656 = vmatprep.mubr.msk.f32.mxu1 %vm269_vm1, %v261_v10 }
 0x101   : > { %v262_v11 = vpop.trf.xlu0 }
 0x102   : > { %657 = vmatmul.mubr.msk.f32.vlgmr.msra.gmra.mrb[0].mxu1 %vm269_vm1, %v262_v11 }
 0x105   : > { %v263_v12 = vpop.trf.xlu0 }
 0x106   : > { %659 = vmatprep.mubr.msk.f32.mxu1 %vm269_vm1, %v263_v12 }
 0x109   : > { %v264_v13 = vpop.trf.xlu0 }
 0x10a   : > { %660 = vmatmul.mubr.msk.f32.gmra.mrb[2].mxu1 %vm269_vm1, %v264_v13 }
 0x10d   : > { %v265_v14 = vpop.trf.xlu0 }
 0x10e   : > { %662 = vmatprep.mubr.msk.f32.mxu1 %vm269_vm1, %v265_v14 }
 0x111   : > { %v266_v15 = vpop.trf.xlu0 }
 0x112   : > { %663 = vmatmul.mubr.msk.f32.gmra.mrb[4].mxu1 %vm269_vm1, %v266_v15 }
 0x115   : > { %v267_v16 = vpop.trf.xlu0 }
 0x116   : > { %665 = vmatprep.mubr.msk.f32.mxu1 %vm269_vm1, %v267_v16 }
 0x119   : > { %v268_v17 = vpop.trf.xlu0 }
 0x11a   : > { %666 = vmatmul.mubr.msk.f32.gmra.mrb[6].mxu1 %vm269_vm1, %v268_v17 }
 0x1b5   : > { %v646_v19 = vpop.f32.mrb[0].mxu0 }
 0x1b6   : > { %v394_v20 = vadd.f32 %v646_v19, %v605_v18  ;;  %v388_v21 = vpop.f32.mrb[1].mxu0 }
 0x1b7   : > { %v389_v22 = vadd.f32 %v605_v18, %v388_v21 }
 0x1b8   : > { %469 = vst.msk [vmem:[%s1087_s30 + $0x8] sm:$0xff] %vm467_vm2, %v394_v20 }
 0x1b9   : > { %468 = vst.msk [vmem:[%s1087_s30] sm:$0xff] %vm467_vm2, %v389_v22 }
 0x1bd   : > { %v649_v23 = vpop.f32.mrb[2].mxu0 }
 0x1be   : > { %v404_v24 = vadd.f32 %v649_v23, %v605_v18  ;;  %v398_v25 = vpop.f32.mrb[3].mxu0 }
 0x1bf   : > { %v399_v26 = vadd.f32 %v605_v18, %v398_v25 }
 0x1c0   : > { %471 = vst.msk [vmem:[%s1087_s30 + $0x18] sm:$0xff] %vm467_vm2, %v404_v24 }
 0x1c1   : > { %470 = vst.msk [vmem:[%s1087_s30 + $0x10] sm:$0xff] %vm467_vm2, %v399_v26 }
 0x1c5   : > { %v652_v27 = vpop.f32.mrb[4].mxu0 }
 0x1c6   : > { %v414_v28 = vadd.f32 %v652_v27, %v605_v18  ;;  %v408_v29 = vpop.f32.mrb[5].mxu0 }
 0x1c7   : > { %v409_v30 = vadd.f32 %v605_v18, %v408_v29 }
 0x1c8   : > { %473 = vst.msk [vmem:[%s1087_s30 + $0x28] sm:$0xff] %vm467_vm2, %v414_v28 }
 0x1c9   : > { %472 = vst.msk [vmem:[%s1087_s30 + $0x20] sm:$0xff] %vm467_vm2, %v409_v30 }
 0x1cd   : > { %v655_v31 = vpop.f32.mrb[6].mxu0 }
 0x1ce   : > { %v424_v32 = vadd.f32 %v655_v31, %v605_v18  ;;  %v418_v33 = vpop.f32.mrb[7].mxu0 }
 0x1cf   : > { %v419_v34 = vadd.f32 %v605_v18, %v418_v33 }
 0x1d0   : > { %475 = vst.msk [vmem:[%s1087_s30 + $0x38] sm:$0xff] %vm467_vm2, %v424_v32 }
 0x1d1   : > { %474 = vst.msk [vmem:[%s1087_s30 + $0x30] sm:$0xff] %vm467_vm2, %v419_v34 }
 0x1d5   : > { %v658_v35 = vpop.f32.mrb[0].mxu1 }
 0x1d6   : > { %v434_v36 = vadd.f32 %v658_v35, %v605_v18  ;;  %v428_v37 = vpop.f32.mrb[1].mxu1 }
 0x1d7   : > { %v429_v38 = vadd.f32 %v605_v18, %v428_v37 }
 0x1d8   : > { %477 = vst.msk [vmem:[%s1087_s30 + $0x48] sm:$0xff] %vm467_vm2, %v434_v36 }
 0x1d9   : > { %476 = vst.msk [vmem:[%s1087_s30 + $0x40] sm:$0xff] %vm467_vm2, %v429_v38 }
 0x1dd   : > { %v661_v39 = vpop.f32.mrb[2].mxu1 }
 0x1de   : > { %v444_v40 = vadd.f32 %v661_v39, %v605_v18  ;;  %v438_v41 = vpop.f32.mrb[3].mxu1 }
 0x1df   : > { %v439_v42 = vadd.f32 %v605_v18, %v438_v41 }
 0x1e0   : > { %479 = vst.msk [vmem:[%s1087_s30 + $0x58] sm:$0xff] %vm467_vm2, %v444_v40 }
 0x1e1   : > { %478 = vst.msk [vmem:[%s1087_s30 + $0x50] sm:$0xff] %vm467_vm2, %v439_v42 }
 0x1e5   : > { %v664_v43 = vpop.f32.mrb[4].mxu1 }
 0x1e6   : > { %v454_v44 = vadd.f32 %v664_v43, %v605_v18  ;;  %v448_v45 = vpop.f32.mrb[5].mxu1 }
 0x1e7   : > { %v449_v46 = vadd.f32 %v605_v18, %v448_v45 }
 0x1e8   : > { %481 = vst.msk [vmem:[%s1087_s30 + $0x68] sm:$0xff] %vm467_vm2, %v454_v44 }
 0x1e9   : > { %480 = vst.msk [vmem:[%s1087_s30 + $0x60] sm:$0xff] %vm467_vm2, %v449_v46 }
 0x1ed   : > { %v667_v47 = vpop.f32.mrb[6].mxu1 }
 0x1ee   : > { %v464_v48 = vadd.f32 %v667_v47, %v605_v18  ;;  %v458_v49 = vpop.f32.mrb[7].mxu1 }
 0x1ef   : > { %v459_v50 = vadd.f32 %v605_v18, %v458_v49 }
 0x1f0   : > { %483 = vst.msk [vmem:[%s1087_s30 + $0x78] sm:$0xff] %vm467_vm2, %v464_v48 }
 0x1f1   : > { %482 = vst.msk [vmem:[%s1087_s30 + $0x70] sm:$0xff] %vm467_vm2, %v459_v50 }
 0x1f2 PF: > { %s17_s19 = sadd.s32 1, %s881_s19   ;;  %s1164_s12 = smov %s857_s13 }
 0x1f3   : > { %p14_p4 = scmp.ge.s32.totalorder %s17_s19, 6   ;;  %s1165_s13 = smov %s861_s14 }
 0x1f4   : > { %s1166_s14 = smov %s1009_s8  ;;  %s1167_s15 = smov %s873_s17 }
 0x1f5   : > { %s1168_s16 = smov %s877_s18  ;;  %s1169_s17 = smov %s1172_s27 }
 0x1f6   : > { %s1170_s18 = smov %s1176_s11  ;;  %16 = sbr.rel (!%p14_p4) target bundleno = 8 (0x8), region = 76 }
 0x1fd   :  { %514 = vsyncpa [#allocation3], 1 }
 0x1fe   :  { %516 = vsyncpa [#allocation3 + $0x1], 1 }
 0x1ff   :  { %517 = vsyncpa [#allocation5], 1 }

</bundles_post_ra>
